<compile_context>
chip_gen: v6e
topology: v6e:2x2x1
jax: 0.10.0
libtpu: 0.0.40
codegen_flags: <defaults>
</compile_context>

<pallas_src>
import functools

import jax
import jax.numpy as jnp
from jax import lax
from jax.experimental import pallas as pl
from jax.experimental.pallas import tpu as pltpu


# ----------------------------- Pallas kernel ------------------------------- #
def _conv_matmul_kernel(p_ref, w_ref, b_ref, o_ref):
    """One fused conv-as-matmul per batch element.

    p_ref: (1, K, M)    im2col patches, K = Cin*KH*KW, M = H*W (lane axis)
    w_ref: (Cout, K)    reshaped conv weights
    b_ref: (Cout, 1)    bias
    o_ref: (1, Cout, M) output block (flattened NCHW)
    """
    acc = jnp.dot(
        w_ref[...], p_ref[0], preferred_element_type=jnp.float32
    )  # (Cout, M) on the MXU, single K=Cin*KH*KW contraction
    acc = acc + b_ref[...]  # bias added once; (Cout, 1) broadcasts over lanes
    o_ref[...] = acc.reshape(o_ref.shape).astype(o_ref.dtype)


def pallas_conv2d_nchw(x_nchw, w_oihw, bias, *, conv_pad):
    """stride=1 Conv2d (symmetric zero padding `conv_pad`) via a Pallas matmul.

    x_nchw : (N, Cin, H, W)
    w_oihw : (Cout, Cin, KH, KW)
    bias   : (Cout,)
    returns: (N, Cout, Ho, Wo)
    """
    N, Cin, H, W = x_nchw.shape
    Cout, _, KH, KW = w_oihw.shape
    Ho = H + 2 * conv_pad - KH + 1
    Wo = W + 2 * conv_pad - KW + 1
    K = Cin * KH * KW
    M = Ho * Wo

    # zero padding of the conv itself (PyTorch Conv2d padding_mode='zeros')
    x_zp = jnp.pad(
        x_nchw, ((0, 0), (0, 0), (conv_pad, conv_pad), (conv_pad, conv_pad))
    )

    # im2col done once outside the kernel:
    #   patches[n, ci*KH*KW + ky*KW + kx, oy*Wo + ox] = x_zp[n, ci, oy+ky, ox+kx]
    # K-order (ci, ky, kx) matches w_oihw.reshape(Cout, Cin*KH*KW).
    taps = [
        x_zp[:, :, ky:ky + Ho, kx:kx + Wo]
        for ky in range(KH)
        for kx in range(KW)
    ]
    patches = jnp.stack(taps, axis=2).reshape(N, K, M)
    w2d = w_oihw.reshape(Cout, K)
    b2d = bias.reshape(Cout, 1)

    cost = pl.CostEstimate(
        flops=2 * N * M * Cout * K,
        transcendentals=0,
        bytes_accessed=4 * (patches.size + w2d.size + b2d.size + N * Cout * M),
    )

    out_flat = pl.pallas_call(
        _conv_matmul_kernel,
        out_shape=jax.ShapeDtypeStruct((N, Cout, M), x_nchw.dtype),
        grid=(N,),
        in_specs=[
            pl.BlockSpec((1, K, M), lambda n: (n, 0, 0)),
            pl.BlockSpec((Cout, K), lambda n: (0, 0)),
            pl.BlockSpec((Cout, 1), lambda n: (0, 0)),
        ],
        out_specs=pl.BlockSpec((1, Cout, M), lambda n: (n, 0, 0)),
        compiler_params=pltpu.CompilerParams(
            dimension_semantics=("parallel",),
        ),
        cost_estimate=cost,
    )(patches, w2d, b2d)

    # (N, Cout, H*W) -> (N, Cout, H, W): trailing-dim reshape, no transpose.
    return out_flat.reshape(N, Cout, Ho, Wo)


# ----------------------------- SwingConv2d ---------------------------------- #
def _jitter_offsets(key, jitter_size):
    """Deterministic stand-in for np.random.randint(2*jitter_size + 1)."""
    kx, ky = jax.random.split(key)
    src_x = jax.random.randint(kx, (), 0, 2 * jitter_size + 1, dtype=jnp.int32)
    src_y = jax.random.randint(ky, (), 0, 2 * jitter_size + 1, dtype=jnp.int32)
    return src_x, src_y


@functools.partial(jax.jit, static_argnames=("jitter_size", "conv_pad"))
def swing_conv2d(x_nchw, w_oihw, bias, key, *, jitter_size, conv_pad):
    """Forward pass of SwingConv2d (reflect pad + jitter crop + Conv2d)."""
    N, Cin, H, W = x_nchw.shape
    j = jitter_size

    src_x, src_y = _jitter_offsets(key, j)

    # reflect pad (matches F.pad(..., mode='reflect') on the last two dims)
    x_rpad = jnp.pad(x_nchw, ((0, 0), (0, 0), (j, j), (j, j)), mode="reflect")
    # shifted crop back to the original spatial size
    x_jit = lax.dynamic_slice(
        x_rpad, (jnp.int32(0), jnp.int32(0), src_y, src_x), (N, Cin, H, W)
    )

    return pallas_conv2d_nchw(x_jit, w_oihw, bias, conv_pad=conv_pad)


# ------------------------------- main --------------------------------------- #
if __name__ == "__main__":
    # org_module: nn.Conv2d(in_channels=4, out_channels=8, kernel_size=3,
    #                       stride=1, padding=1)
    N, Cin, H, W = 2, 4, 16, 16
    Cout, KH, KW = 8, 3, 3
    jitter_size = 1
    conv_pad = 1

    root = jax.random.PRNGKey(0)
    k_x, k_w, k_b, k_jit = jax.random.split(root, 4)

    x = jax.random.normal(k_x, (N, Cin, H, W), dtype=jnp.float32)
    # deterministic parameter init (PyTorch-like uniform scale)
    fan_in = Cin * KH * KW
    bound = 1.0 / (fan_in ** 0.5)
    w = jax.random.uniform(k_w, (Cout, Cin, KH, KW), jnp.float32, -bound, bound)
    b = jax.random.uniform(k_b, (Cout,), jnp.float32, -bound, bound)

    out = swing_conv2d(
        x, w, b, k_jit, jitter_size=jitter_size, conv_pad=conv_pad
    )
    out = jax.block_until_ready(out)
    assert out.shape == (N, Cout, H, W), out.shape

    # sanity check: same jittered input through XLA's conv must match the
    # Pallas conv.
    src_x, src_y = _jitter_offsets(k_jit, jitter_size)
    x_rpad = jnp.pad(
        x,
        ((0, 0), (0, 0), (jitter_size, jitter_size), (jitter_size, jitter_size)),
        mode="reflect",
    )
    x_jit = lax.dynamic_slice(
        x_rpad, (jnp.int32(0), jnp.int32(0), src_y, src_x), (N, Cin, H, W)
    )
    ref = lax.conv_general_dilated(
        x_jit, w, window_strides=(1, 1),
        padding=((conv_pad, conv_pad), (conv_pad, conv_pad)),
        dimension_numbers=("NCHW", "OIHW", "NCHW"),
    ) + b.reshape(1, Cout, 1, 1)
    assert jnp.allclose(out, ref, atol=1e-4, rtol=1e-4), float(
        jnp.max(jnp.abs(out - ref))
    )

    print("KERNEL_OK")
</pallas_src>

<mosaic_0001>
module attributes {stable_mosaic.version = 11 : i64} {
  func.func @_conv_matmul_kernel(%arg0: i32, %arg1: memref<1x36x256xf32, #tpu.memory_space<vmem>>, %arg2: memref<8x36xf32, #tpu.memory_space<vmem>>, %arg3: memref<8x1xf32, #tpu.memory_space<vmem>>, %arg4: memref<1x8x256xf32, #tpu.memory_space<vmem>>) attributes {dimension_semantics = [#tpu.dimension_semantics<parallel>], iteration_bounds = array<i64: 2>, scalar_prefetch = 0 : i64, scratch_operands = 0 : i64, tpu.core_type = #tpu.core_type<tc>, window_params = [{transform_indices = @transform_0, window_bounds = array<i64: 1, 36, 256>}, {pipeline_mode = #tpu.pipeline_mode<synchronous>, transform_indices = @transform_1, window_bounds = array<i64: 8, 36>}, {pipeline_mode = #tpu.pipeline_mode<synchronous>, transform_indices = @transform_2, window_bounds = array<i64: 8, 1>}, {transform_indices = @transform_3, window_bounds = array<i64: 1, 8, 256>}]} {
    %c0 = arith.constant 0 : index
    %c0_0 = arith.constant 0 : index
    %0 = vector.load %arg2[%c0, %c0_0] : memref<8x36xf32, #tpu.memory_space<vmem>>, vector<8x36xf32>
    %c0_1 = arith.constant 0 : index
    %c0_2 = arith.constant 0 : index
    %c0_3 = arith.constant 0 : index
    %1 = vector.load %arg1[%c0_1, %c0_2, %c0_3] : memref<1x36x256xf32, #tpu.memory_space<vmem>>, vector<1x36x256xf32>
    %2 = vector.shape_cast %1 : vector<1x36x256xf32> to vector<36x256xf32>
    %cst = arith.constant dense<0.000000e+00> : vector<8x256xf32>
    %3 = tpu.matmul %0, %2, %cst {dimension_numbers = #tpu.dot_dimension_numbers<[1], [0], [0], [1], [0, 0, 1, 1], [], []>} : vector<8x36xf32>, vector<36x256xf32>, vector<8x256xf32> -> vector<8x256xf32>
    %c0_4 = arith.constant 0 : index
    %c0_5 = arith.constant 0 : index
    %4 = vector.load %arg3[%c0_4, %c0_5] : memref<8x1xf32, #tpu.memory_space<vmem>>, vector<8x1xf32>
    %5 = vector.broadcast %4 : vector<8x1xf32> to vector<8x256xf32>
    %6 = arith.addf %3, %5 : vector<8x256xf32>
    %7 = vector.shape_cast %6 : vector<8x256xf32> to vector<1x8x256xf32>
    %c0_6 = arith.constant 0 : index
    %c0_7 = arith.constant 0 : index
    %c0_8 = arith.constant 0 : index
    %8 = vector.load %arg4[%c0_6, %c0_7, %c0_8] : memref<1x8x256xf32, #tpu.memory_space<vmem>>, vector<1x8x256xf32>
    tpu.vector_store %arg4[%c0_6, %c0_7, %c0_8], %7 {strides = array<i32>} : memref<1x8x256xf32, #tpu.memory_space<vmem>>, vector<1x8x256xf32>,
    return
  }
  func.func @transform_0(%arg0: i32) -> (i32, i32, i32) {
    %c0_i32 = arith.constant 0 : i32
    %c0_i32_0 = arith.constant 0 : i32
    %c0_i32_1 = arith.constant 0 : i32
    return %arg0, %c0_i32, %c0_i32_0 : i32, i32, i32
  }
  func.func @transform_1(%arg0: i32) -> (i32, i32) {
    %c0_i32 = arith.constant 0 : i32
    %c0_i32_0 = arith.constant 0 : i32
    %c0_i32_1 = arith.constant 0 : i32
    return %c0_i32, %c0_i32_0 : i32, i32
  }
  func.func @transform_2(%arg0: i32) -> (i32, i32) {
    %c0_i32 = arith.constant 0 : i32
    %c0_i32_0 = arith.constant 0 : i32
    %c0_i32_1 = arith.constant 0 : i32
    return %c0_i32, %c0_i32_0 : i32, i32
  }
  func.func @transform_3(%arg0: i32) -> (i32, i32, i32) {
    %c0_i32 = arith.constant 0 : i32
    %c0_i32_0 = arith.constant 0 : i32
    %c0_i32_1 = arith.constant 0 : i32
    return %arg0, %c0_i32, %c0_i32_0 : i32, i32, i32
  }
}

</mosaic_0001>

<bundles_post_ra>
// kernel: swing_conv2d.1
= control target key start
LH: loop header
LB: loop body
LE: loop exit
PB: predicated region body
PF: predicated region fallthrough
CT: control target
= control target key end

     0   :  { %s383_s12 = smov 0   ;;  %s410_s0 = inlined_call_operand.vmem [shape: f32[2,36,256], index: 0, kind: input, shape index: {}]   ;;  %s411_s1 = inlined_call_operand.vmem [shape: f32[8,36], index: 1, kind: input, shape index: {}]   ;;  %s412_s2 = inlined_call_operand.vmem [shape: f32[8,1], index: 2, kind: input, shape index: {}]   ;;  %s413_s3 = inlined_call_operand.vmem [shape: f32[2,8,256], index: 3, kind: output, shape index: {}]  }
   0x1 LB: > { %s327_s13 = sadd.s32 4294967295, %s359_s12   ;;  %p331_p0 = scmp.ge.s32.totalorder %s359_s12, 1  ;;  %s359_s12 = sphi %s383_s12, %s13_s12  }
   0x2   : > { %p137_p1 = scmp.lt.s32.totalorder %s359_s12, 3 }
   0x4   : > { %p138_p2 = pnand %p331_p0, %p137_p1 }
   0x5   : > { %p161_p3 = scmp.lt.s32.totalorder (!%p138_p2), %s327_s13, 1 }
   0x6   : > { %141 = sbr.rel (%p138_p2) target bundleno = 224 (0xe0), region = 32 }
   0xb   : > { %v361_v0 = vmov 0.0   ;;  %v362_v1 = vmov 0   ;;  %v182_v2 = vld [vmem:[%s412_s2] sm:$0xff]  ;;  %s415_s13 = smov (!%p161_p3, %s327_s13), 1  ;;  %vm192_vm0 = vcmask 1043456   ;;  %vm188_vm1 = vcmask 293888  }
   0xc   : > { %263 = vmatprep.mubr.f32.mxu0 %v361_v0  ;;  %352 = vset.pattern.permute.xlu0 %v362_v1  ;;  %s341_s16 = smul.u32 80, %s415_s13  ;;  %v171_v13 = vld [vmem:[%s411_s1] sm:$0xff]  ;;  %s340_s22 = sshll.u32 %s415_s13, 4 }
   0xd   : > { %185 = vperm.xlu0 %352, %v182_v2   ;;  %s170_s25 = scalar_lea.vmem %s413_s3, %s340_s22 }
   0xe   : > { %s165_s19 = scalar_lea.vmem %s410_s0, %s341_s16 }
   0xf   : > { %v181_v3 = vld [vmem:[%s165_s19 + $0x48] sm:$0xf]  ;;  %v180_v4 = vld [vmem:[%s165_s19 + $0x40] sm:$0xf]  ;;  %v179_v5 = vld [vmem:[%s165_s19 + $0x38] sm:$0xff] }
  0x10   : > { %335 = vmatprep.subr.msk.mxu0 %vm192_vm0, %v181_v3  ;;  %v178_v6 = vld [vmem:[%s165_s19 + $0x30] sm:$0xff]  ;;  %v177_v7 = vld [vmem:[%s165_s19 + $0x28] sm:$0xff]  ;;  %v176_v8 = vld [vmem:[%s165_s19 + $0x20] sm:$0xff] }
  0x11   : > { %336 = vmatpush1.msk.msra.mxu0 %vm192_vm0, %v180_v4  ;;  %v175_v9 = vld [vmem:[%s165_s19 + $0x18] sm:$0xff]  ;;  %v174_v10 = vld [vmem:[%s165_s19 + $0x10] sm:$0xff]  ;;  %v173_v11 = vld [vmem:[%s165_s19 + $0x8] sm:$0xff] }
  0x12   : > { %223 = vmatprep.subr.mxu0 %v179_v5  ;;  %v172_v12 = vld [vmem:[%s165_s19] sm:$0xff] }
  0x13   : > { %224 = vmatpush1.msra.mxu0 %v178_v6 }
  0x14   : > { %225 = vmatprep.subr.mxu0 %v177_v7 }
  0x15   : > { %226 = vmatpush1.msra.mxu0 %v176_v8 }
  0x16   : > { %227 = vmatprep.subr.mxu0 %v175_v9 }
  0x17   : > { %228 = vmatpush1.msra.mxu0 %v174_v10 }
  0x18   : > { %229 = vmatprep.subr.mxu0 %v173_v11 }
  0x19   : > { %230 = vmatpush1.msra.mxu0 %v172_v12 }
  0x1a   : > { %337 = vmatmul.mubr.msk.f32.vlgmr.msra.gmra.mxu0 %vm188_vm1, %v171_v13 }
  0x88   : > { %v186_v14 = vpop.permute.xlu0 %185 }
  0xda   : > { %v265_v15 = vpop.f32.mrf.mxu0 }
  0xdb   : > { %v266_v16 = vadd.f32 %v265_v15, %v186_v14 }
  0xdc   : > { %v267_v17 = vpop.f32.mrf.mxu0 }
  0xdd   : > { %270 = vst [vmem:[%s170_s25] sm:$0xff] %v266_v16  ;;  %v268_v18 = vadd.f32 %v267_v17, %v186_v14 }
  0xdf   : > { %271 = vst [vmem:[%s170_s25 + $0x8] sm:$0xff] %v268_v18 }
  0xe0 PF: > { %s13_s12 = sadd.s32 1, %s359_s12  }
  0xe1   : > { %p10_p4 = scmp.ge.s32.totalorder %s13_s12, 4  }
  0xe3   :  { %12 = sbr.rel (!%p10_p4) target bundleno = 1 (0x1), region = 62 }

</bundles_post_ra>
